<compile_context>
chip_gen: v6e
topology: v6e:2x2x1
jax: 0.10.0
libtpu: 0.0.40
codegen_flags: <defaults>
</compile_context>

<pallas_src>
import functools

import jax
import jax.numpy as jnp
from jax.experimental import pallas as pl
from jax.experimental.pallas import tpu as pltpu


def _na_disen_kernel(a_ref, x_ref, w1_ref, b1_ref, w2_ref, b2_ref,
                     *rest, with_linear, tm):
    """One grid step == one row tile of the output."""
    o_ref = rest[-1]
    r = pl.program_id(0)

    # Adjacency row tile (self-loop identity already folded in).  bf16 holds
    # the small integer counts exactly; upcast so the matmul is f32-exact.
    a = a_ref[...].astype(jnp.float32)                       # (tm, N)
    x = x_ref[...]                                           # (N, in_dim)

    # GIN aggregation for all k chunks at once:  (A + I) @ X
    agg = jnp.dot(a, x, preferred_element_type=jnp.float32)  # (tm, in_dim)

    # Per-chunk GIN MLPs fused as block-diagonal weights (chunks don't mix).
    h = jnp.dot(agg, w1_ref[...], preferred_element_type=jnp.float32) + b1_ref[...]
    h = jnp.maximum(h, 0.0)
    z = jnp.dot(h, w2_ref[...], preferred_element_type=jnp.float32) + b2_ref[...]

    if with_linear:
        wl_ref, bl_ref = rest[0], rest[1]
        row0 = pl.multiple_of(r * tm, tm)
        x_rows = x_ref[pl.ds(row0, tm), :]                   # (tm, in_dim)
        z = z + jnp.dot(x_rows, wl_ref[...],
                        preferred_element_type=jnp.float32) + bl_ref[...]

    o_ref[...] = z.astype(o_ref.dtype)


def _block_diag(w):
    """Stacked (k, a, b) blocks -> (k*a, k*b) block-diagonal matrix."""
    k, a, b = w.shape
    out = jnp.zeros((k * a, k * b), w.dtype)
    for i in range(k):
        out = out.at[i * a:(i + 1) * a, i * b:(i + 1) * b].set(w[i])
    return out


def build_adjacency(edge_index, num_nodes):
    """Dense (target <- source) adjacency with the GIN self term (eps=0)
    folded in as +I.  Entries are small integer counts -> exact in bf16."""
    src, dst = edge_index[0], edge_index[1]
    adj = jnp.zeros((num_nodes, num_nodes), jnp.float32).at[dst, src].add(1.0)
    adj = adj + jnp.eye(num_nodes, dtype=jnp.float32)
    return adj.astype(jnp.bfloat16)


def fuse_params(params, with_linear=True):
    """Fuse per-chunk weights into block-diagonal matrices / concatenated
    biases so all k chunks run through single lane-dense matmuls.  Call this
    once outside the per-step path when weights are reused."""
    k, _, oc = params["w1"].shape
    fused = {
        "w1": _block_diag(params["w1"]),
        "b1": params["b1"].reshape(1, k * oc),
        "w2": _block_diag(params["w2"]),
        "b2": params["b2"].reshape(1, k * oc),
    }
    if with_linear:
        fused["wl"] = _block_diag(params["wl"])
        fused["bl"] = params["bl"].reshape(1, k * oc)
    return fused


def na_disen_op(x, edge_index, edge_weights, edge_attr, params,
                with_linear=True, k=4, adj=None, fused=None, tm=None):
    """Forward pass of NaDisenOp.

    x:          (N, in_dim) float32 node features
    edge_index: (2, E) int32, row 0 = source, row 1 = target (PyG convention)
    edge_weights / edge_attr: accepted for API parity; unused by GINConv.
    params:     dict of stacked per-chunk weights (see init_params).
    adj/fused:  optional precomputed adjacency / fused weights (hoist out of
                the per-call path when edge_index / weights are static).
    """
    del edge_weights, edge_attr  # GINConv does not use them

    N, in_dim = x.shape
    oc = params["w1"].shape[-1]
    out_dim = k * oc

    if adj is None:
        # TODO(synk): edge_index is typically static across CARNAS cell calls;
        # pass `adj` precomputed to avoid re-materializing the dense N x N.
        adj = build_adjacency(edge_index, N)
    if fused is None:
        fused = fuse_params(params, with_linear=with_linear)

    x = x.astype(jnp.float32)

    # Row-tile the adjacency matmul so large N stays within v7x's VMEM.
    if tm is None:
        tm = N if N <= 512 else 256
    assert N % tm == 0 and (tm == N or tm % 8 == 0), (N, tm)

    kernel = functools.partial(_na_disen_kernel, with_linear=with_linear, tm=tm)

    in_specs = [
        pl.BlockSpec((tm, N), lambda r: (r, 0)),             # adjacency row tile
        pl.BlockSpec((N, in_dim), lambda r: (0, 0)),         # full X (shared)
        pl.BlockSpec((in_dim, out_dim), lambda r: (0, 0)),   # block-diag W1
        pl.BlockSpec((1, out_dim), lambda r: (0, 0)),        # b1 (concatenated)
        pl.BlockSpec((out_dim, out_dim), lambda r: (0, 0)),  # block-diag W2
        pl.BlockSpec((1, out_dim), lambda r: (0, 0)),        # b2
    ]
    args = [adj, x, fused["w1"], fused["b1"], fused["w2"], fused["b2"]]
    if with_linear:
        in_specs += [
            pl.BlockSpec((in_dim, out_dim), lambda r: (0, 0)),  # block-diag W_lin
            pl.BlockSpec((1, out_dim), lambda r: (0, 0)),       # b_lin
        ]
        args += [fused["wl"], fused["bl"]]

    return pl.pallas_call(
        kernel,
        out_shape=jax.ShapeDtypeStruct((N, out_dim), jnp.float32),
        grid_spec=pltpu.PrefetchScalarGridSpec(
            num_scalar_prefetch=0,
            grid=(N // tm,),
            in_specs=in_specs,
            out_specs=pl.BlockSpec((tm, out_dim), lambda r: (r, 0)),
        ),
        compiler_params=pltpu.CompilerParams(
            dimension_semantics=("parallel",)),   # row tiles are independent
    )(*args)


def init_params(key, in_dim, out_dim, k=4):
    """Deterministic synthetic weights, stacked per chunk."""
    ci, oc = in_dim // k, out_dim // k
    ks = jax.random.split(key, 6)
    scale = 0.1
    return {
        "w1": scale * jax.random.normal(ks[0], (k, ci, oc), jnp.float32),
        "b1": scale * jax.random.normal(ks[1], (k, 1, oc), jnp.float32),
        "w2": scale * jax.random.normal(ks[2], (k, oc, oc), jnp.float32),
        "b2": scale * jax.random.normal(ks[3], (k, 1, oc), jnp.float32),
        "wl": scale * jax.random.normal(ks[4], (k, ci, oc), jnp.float32),
        "bl": scale * jax.random.normal(ks[5], (k, 1, oc), jnp.float32),
    }


def _reference(x, edge_index, params, with_linear, k):
    """Pure-JAX per-chunk reference (matches the PyTorch module)."""
    N, in_dim = x.shape
    ci = in_dim // k
    src, dst = edge_index[0], edge_index[1]
    adj = jnp.zeros((N, N), jnp.float32).at[dst, src].add(1.0)
    dot = functools.partial(jnp.dot, precision=jax.lax.Precision.HIGHEST)
    outs = []
    for i in range(k):
        xi = x[:, i * ci:(i + 1) * ci]
        agg = dot(adj, xi) + xi
        h = jnp.maximum(dot(agg, params["w1"][i]) + params["b1"][i], 0.0)
        z = dot(h, params["w2"][i]) + params["b2"][i]
        if with_linear:
            z = z + dot(xi, params["wl"][i]) + params["bl"][i]
        outs.append(z)
    return jnp.concatenate(outs, axis=1)


if __name__ == "__main__":
    key = jax.random.PRNGKey(0)
    k_x, k_e, k_w, k_ew = jax.random.split(key, 4)

    N = 32        # number of graph nodes
    E = 64        # number of edges
    in_dim = 32
    out_dim = 32
    k = 4

    x = jax.random.normal(k_x, (N, in_dim), jnp.float32)
    edge_index = jax.random.randint(k_e, (2, E), 0, N, dtype=jnp.int32)
    edge_weights = jax.random.uniform(k_ew, (E,), jnp.float32)  # unused by GIN
    edge_attr = None                                            # unused by GIN
    params = init_params(k_w, in_dim, out_dim, k=k)

    # Hoist static preprocessing out of the per-call path.
    adj = build_adjacency(edge_index, N)
    fused = fuse_params(params, with_linear=True)

    res = na_disen_op(x, edge_index, edge_weights, edge_attr, params,
                      with_linear=True, k=k, adj=adj, fused=fused)
    jax.block_until_ready(res)

    assert res.shape == (N, out_dim), res.shape

    ref = _reference(x, edge_index, params, with_linear=True, k=k)
    assert jnp.allclose(res, ref, rtol=5e-2, atol=5e-2), (
        float(jnp.max(jnp.abs(res - ref))))

    print("KERNEL_OK")
</pallas_src>

<mosaic_0001>
module attributes {stable_mosaic.version = 11 : i64} {
  func.func @_na_disen_kernel(%arg0: i32, %arg1: memref<32x32xbf16, #tpu.memory_space<vmem>>, %arg2: memref<32x32xf32, #tpu.memory_space<vmem>>, %arg3: memref<32x32xf32, #tpu.memory_space<vmem>>, %arg4: memref<1x32xf32, #tpu.memory_space<vmem>>, %arg5: memref<32x32xf32, #tpu.memory_space<vmem>>, %arg6: memref<1x32xf32, #tpu.memory_space<vmem>>, %arg7: memref<32x32xf32, #tpu.memory_space<vmem>>, %arg8: memref<1x32xf32, #tpu.memory_space<vmem>>, %arg9: memref<32x32xf32, #tpu.memory_space<vmem>>) attributes {dimension_semantics = [#tpu.dimension_semantics<parallel>], iteration_bounds = array<i64: 1>, scalar_prefetch = 0 : i64, scratch_operands = 0 : i64, tpu.core_type = #tpu.core_type<tc>, window_params = [{transform_indices = @transform_0, window_bounds = array<i64: 32, 32>}, {pipeline_mode = #tpu.pipeline_mode<synchronous>, transform_indices = @transform_1, window_bounds = array<i64: 32, 32>}, {pipeline_mode = #tpu.pipeline_mode<synchronous>, transform_indices = @transform_2, window_bounds = array<i64: 32, 32>}, {pipeline_mode = #tpu.pipeline_mode<synchronous>, transform_indices = @transform_3, window_bounds = array<i64: 1, 32>}, {pipeline_mode = #tpu.pipeline_mode<synchronous>, transform_indices = @transform_4, window_bounds = array<i64: 32, 32>}, {pipeline_mode = #tpu.pipeline_mode<synchronous>, transform_indices = @transform_5, window_bounds = array<i64: 1, 32>}, {pipeline_mode = #tpu.pipeline_mode<synchronous>, transform_indices = @transform_6, window_bounds = array<i64: 32, 32>}, {pipeline_mode = #tpu.pipeline_mode<synchronous>, transform_indices = @transform_7, window_bounds = array<i64: 1, 32>}, {transform_indices = @transform_8, window_bounds = array<i64: 32, 32>}]} {
    %c0 = arith.constant 0 : index
    %c0_0 = arith.constant 0 : index
    %0 = vector.load %arg1[%c0, %c0_0] : memref<32x32xbf16, #tpu.memory_space<vmem>>, vector<32x32xbf16>
    %1 = arith.extf %0 : vector<32x32xbf16> to vector<32x32xf32>
    %c0_1 = arith.constant 0 : index
    %c0_2 = arith.constant 0 : index
    %2 = vector.load %arg2[%c0_1, %c0_2] : memref<32x32xf32, #tpu.memory_space<vmem>>, vector<32x32xf32>
    %cst = arith.constant dense<0.000000e+00> : vector<32x32xf32>
    %3 = tpu.matmul %1, %2, %cst {dimension_numbers = #tpu.dot_dimension_numbers<[1], [0], [0], [1], [0, 0, 1, 1], [], []>} : vector<32x32xf32>, vector<32x32xf32>, vector<32x32xf32> -> vector<32x32xf32>
    %c0_3 = arith.constant 0 : index
    %c0_4 = arith.constant 0 : index
    %4 = vector.load %arg3[%c0_3, %c0_4] : memref<32x32xf32, #tpu.memory_space<vmem>>, vector<32x32xf32>
    %cst_5 = arith.constant dense<0.000000e+00> : vector<32x32xf32>
    %5 = tpu.matmul %3, %4, %cst_5 {dimension_numbers = #tpu.dot_dimension_numbers<[1], [0], [0], [1], [0, 0, 1, 1], [], []>} : vector<32x32xf32>, vector<32x32xf32>, vector<32x32xf32> -> vector<32x32xf32>
    %c0_6 = arith.constant 0 : index
    %c0_7 = arith.constant 0 : index
    %6 = vector.load %arg4[%c0_6, %c0_7] : memref<1x32xf32, #tpu.memory_space<vmem>>, vector<1x32xf32>
    %7 = vector.broadcast %6 : vector<1x32xf32> to vector<32x32xf32>
    %8 = arith.addf %5, %7 : vector<32x32xf32>
    %cst_8 = arith.constant 0.000000e+00 : f32
    %9 = vector.broadcast %cst_8 : f32 to vector<32x32xf32>
    %10 = arith.maximumf %8, %9 : vector<32x32xf32>
    %c0_9 = arith.constant 0 : index
    %c0_10 = arith.constant 0 : index
    %11 = vector.load %arg5[%c0_9, %c0_10] : memref<32x32xf32, #tpu.memory_space<vmem>>, vector<32x32xf32>
    %cst_11 = arith.constant dense<0.000000e+00> : vector<32x32xf32>
    %12 = tpu.matmul %10, %11, %cst_11 {dimension_numbers = #tpu.dot_dimension_numbers<[1], [0], [0], [1], [0, 0, 1, 1], [], []>} : vector<32x32xf32>, vector<32x32xf32>, vector<32x32xf32> -> vector<32x32xf32>
    %c0_12 = arith.constant 0 : index
    %c0_13 = arith.constant 0 : index
    %13 = vector.load %arg6[%c0_12, %c0_13] : memref<1x32xf32, #tpu.memory_space<vmem>>, vector<1x32xf32>
    %14 = vector.broadcast %13 : vector<1x32xf32> to vector<32x32xf32>
    %15 = arith.addf %12, %14 : vector<32x32xf32>
    %c32_i32 = arith.constant 32 : i32
    %16 = arith.muli %arg0, %c32_i32 : i32
    %17 = tpu.assume_multiple %16, 32 : i32
    %18 = arith.index_cast %17 : i32 to index
    %c0_14 = arith.constant 0 : index
    %19 = vector.load %arg2[%18, %c0_14] : memref<32x32xf32, #tpu.memory_space<vmem>>, vector<32x32xf32>
    %c0_15 = arith.constant 0 : index
    %c0_16 = arith.constant 0 : index
    %20 = vector.load %arg7[%c0_15, %c0_16] : memref<32x32xf32, #tpu.memory_space<vmem>>, vector<32x32xf32>
    %cst_17 = arith.constant dense<0.000000e+00> : vector<32x32xf32>
    %21 = tpu.matmul %19, %20, %cst_17 {dimension_numbers = #tpu.dot_dimension_numbers<[1], [0], [0], [1], [0, 0, 1, 1], [], []>} : vector<32x32xf32>, vector<32x32xf32>, vector<32x32xf32> -> vector<32x32xf32>
    %22 = arith.addf %15, %21 : vector<32x32xf32>
    %c0_18 = arith.constant 0 : index
    %c0_19 = arith.constant 0 : index
    %23 = vector.load %arg8[%c0_18, %c0_19] : memref<1x32xf32, #tpu.memory_space<vmem>>, vector<1x32xf32>
    %24 = vector.broadcast %23 : vector<1x32xf32> to vector<32x32xf32>
    %25 = arith.addf %22, %24 : vector<32x32xf32>
    %c0_20 = arith.constant 0 : index
    %c0_21 = arith.constant 0 : index
    %26 = vector.load %arg9[%c0_20, %c0_21] : memref<32x32xf32, #tpu.memory_space<vmem>>, vector<32x32xf32>
    tpu.vector_store %arg9[%c0_20, %c0_21], %25 {strides = array<i32>} : memref<32x32xf32, #tpu.memory_space<vmem>>, vector<32x32xf32>,
    return
  }
  func.func @transform_0(%arg0: i32) -> (i32, i32) {
    %c0_i32 = arith.constant 0 : i32
    %c0_i32_0 = arith.constant 0 : i32
    return %arg0, %c0_i32 : i32, i32
  }
  func.func @transform_1(%arg0: i32) -> (i32, i32) {
    %c0_i32 = arith.constant 0 : i32
    %c0_i32_0 = arith.constant 0 : i32
    %c0_i32_1 = arith.constant 0 : i32
    return %c0_i32, %c0_i32_0 : i32, i32
  }
  func.func @transform_2(%arg0: i32) -> (i32, i32) {
    %c0_i32 = arith.constant 0 : i32
    %c0_i32_0 = arith.constant 0 : i32
    %c0_i32_1 = arith.constant 0 : i32
    return %c0_i32, %c0_i32_0 : i32, i32
  }
  func.func @transform_3(%arg0: i32) -> (i32, i32) {
    %c0_i32 = arith.constant 0 : i32
    %c0_i32_0 = arith.constant 0 : i32
    %c0_i32_1 = arith.constant 0 : i32
    return %c0_i32, %c0_i32_0 : i32, i32
  }
  func.func @transform_4(%arg0: i32) -> (i32, i32) {
    %c0_i32 = arith.constant 0 : i32
    %c0_i32_0 = arith.constant 0 : i32
    %c0_i32_1 = arith.constant 0 : i32
    return %c0_i32, %c0_i32_0 : i32, i32
  }
  func.func @transform_5(%arg0: i32) -> (i32, i32) {
    %c0_i32 = arith.constant 0 : i32
    %c0_i32_0 = arith.constant 0 : i32
    %c0_i32_1 = arith.constant 0 : i32
    return %c0_i32, %c0_i32_0 : i32, i32
  }
  func.func @transform_6(%arg0: i32) -> (i32, i32) {
    %c0_i32 = arith.constant 0 : i32
    %c0_i32_0 = arith.constant 0 : i32
    %c0_i32_1 = arith.constant 0 : i32
    return %c0_i32, %c0_i32_0 : i32, i32
  }
  func.func @transform_7(%arg0: i32) -> (i32, i32) {
    %c0_i32 = arith.constant 0 : i32
    %c0_i32_0 = arith.constant 0 : i32
    %c0_i32_1 = arith.constant 0 : i32
    return %c0_i32, %c0_i32_0 : i32, i32
  }
  func.func @transform_8(%arg0: i32) -> (i32, i32) {
    %c0_i32 = arith.constant 0 : i32
    %c0_i32_0 = arith.constant 0 : i32
    return %arg0, %c0_i32 : i32, i32
  }
}

</mosaic_0001>

<bundles_post_ra>
// kernel: tpu_custom_call.1
= control target key start
LH: loop header
LB: loop body
LE: loop exit
PB: predicated region body
PF: predicated region fallthrough
CT: control target
= control target key end

     0   :  { %13 = vsyncpa [#allocation3], 0  ;;  %s954_s0 = inlined_call_operand.hbm [shape: bf16[32,32], index: 0, kind: input, shape index: {}]   ;;  %s955_s1 = inlined_call_operand.hbm [shape: f32[32,32], index: 1, kind: input, shape index: {}]   ;;  %s956_s2 = inlined_call_operand.hbm [shape: f32[32,32], index: 2, kind: input, shape index: {}]   ;;  %s957_s3 = inlined_call_operand.vmem [shape: f32[1,32], index: 3, kind: input, shape index: {}]   ;;  %s958_s4 = inlined_call_operand.hbm [shape: f32[32,32], index: 4, kind: input, shape index: {}]   ;;  %s959_s5 = inlined_call_operand.vmem [shape: f32[1,32], index: 5, kind: input, shape index: {}]   ;;  %s960_s6 = inlined_call_operand.hbm [shape: f32[32,32], index: 6, kind: input, shape index: {}]   ;;  %s961_s7 = inlined_call_operand.vmem [shape: f32[1,32], index: 7, kind: input, shape index: {}]   ;;  %s962_s8 = inlined_call_operand.hbm [shape: f32[32,32], index: 8, kind: output, shape index: {}]  }
   0x1   :  { %14 = vsyncpa [#allocation6], 0 }
   0x2   :  { %15 = vsyncpa [#allocation9], 0 }
   0x3   :  { %16 = vsyncpa [#allocation4], 0  ;;  %s827_s27 = smov [#allocation5]  }
   0x4   :  { %s34_s28 = sshll.u32 %s827_s27, 4  ;;  %s35_s28 = int_to_ptr.vmem [resolvable:$true] %s34_s28 }
   0x5   :  { %s707_s29 = scalar_lea.vmem %s35_s28, 512  ;;  %p712_p1 = scmp.lt.s32.totalorder %s35_s28, %s35_s28 }
   0x6   :  { %p708_p0 = scmp.ne.s32.totalorder %s35_s28, %s707_s29  ;;  %p713_p2 = scmp.lt.s32.totalorder %s707_s29, %s707_s29 }
   0x8   :  { %p714_p3 = por %p713_p2, %p712_p1 }
   0xa   :  { %p715_p4 = pnand %p714_p3, %p708_p0 }
   0xc   :  { %718 = shalt.err (!%p715_p4)
}
   0xd   :  { %s828_s30 = smov 128   ;;  %s829_s9 = smov 8  }
   0xe   :  { %40 = dma.hbm_to_vmem [thread:$0]  %s955_s1, 512, %s35_s28, [#allocation6], %s828_s30, %s828_s30, %s829_s9  }
   0xf   :  { %s830_s12 = smov [#allocation8]   ;;  %s831_s14 = smov [#allocation2]  }
  0x10   :  { %s60_s13 = sshll.u32 %s830_s12, 4  ;;  %s22_s15 = sshll.u32 %s831_s14, 4  ;;  %s61_s13 = int_to_ptr.vmem [resolvable:$true] %s60_s13  ;;  %s23_s15 = int_to_ptr.vmem [resolvable:$true] %s22_s15 }
  0x11   :  { %s727_s16 = scalar_lea.vmem %s61_s13, 512  ;;  %p732_p6 = scmp.lt.s32.totalorder %s61_s13, %s61_s13 }
  0x12   :  { %p728_p5 = scmp.ne.s32.totalorder %s61_s13, %s727_s16  ;;  %p733_p7 = scmp.lt.s32.totalorder %s727_s16, %s727_s16 }
  0x14   :  { %p734_p8 = por %p733_p7, %p732_p6 }
  0x16   :  { %p735_p9 = pnand %p734_p8, %p728_p5 }
  0x18   :  { %738 = shalt.err (!%p735_p9)
}
  0x19   :  { %66 = dma.hbm_to_vmem [thread:$0]  %s958_s4, 512, %s61_s13, [#allocation9], %s828_s30, %s828_s30, %s829_s9  }
  0x1a   :  { %s747_s1 = scalar_lea.vmem %s23_s15, 256  ;;  %p752_p11 = scmp.lt.s32.totalorder %s23_s15, %s23_s15 }
  0x1b   :  { %p748_p10 = scmp.ne.s32.totalorder %s23_s15, %s747_s1  ;;  %p753_p12 = scmp.lt.s32.totalorder %s747_s1, %s747_s1 }
  0x1d   :  { %p754_p13 = por %p753_p12, %p752_p11 }
  0x1f   :  { %p755_p0 = pnand %p754_p13, %p748_p10 }
  0x21   :  { %758 = shalt.err (!%p755_p0)
}
  0x22   :  { %s832_s19 = smov 64   ;;  %s833_s20 = smov 4  }
  0x23   :  { %28 = dma.hbm_to_vmem [thread:$0]  %s954_s0, 256, %s23_s15, [#allocation3], %s832_s19, %s832_s19, %s833_s20  }
  0x24   :  { %s834_s23 = smov [#allocation7]   ;;  %s835_s25 = smov [#allocation10]  }
  0x25   :  { %s46_s24 = sshll.u32 %s834_s23, 4  ;;  %s74_s26 = sshll.u32 %s835_s25, 4  ;;  %s47_s24 = int_to_ptr.vmem [resolvable:$true] %s46_s24  ;;  %s75_s26 = int_to_ptr.vmem [resolvable:$true] %s74_s26 }
  0x26   :  { %s767_s4 = scalar_lea.vmem %s47_s24, 512  ;;  %p772_p2 = scmp.lt.s32.totalorder %s47_s24, %s47_s24 }
  0x27   :  { %p768_p1 = scmp.ne.s32.totalorder %s47_s24, %s767_s4  ;;  %p773_p3 = scmp.lt.s32.totalorder %s767_s4, %s767_s4 }
  0x29   :  { %p774_p4 = por %p773_p3, %p772_p2 }
  0x2b   :  { %p775_p5 = pnand %p774_p4, %p768_p1 }
  0x2d   :  { %778 = shalt.err (!%p775_p5)
}
  0x2e   :  { %52 = dma.hbm_to_vmem [thread:$0]  %s956_s2, 512, %s47_s24, [#allocation6], %s828_s30, %s828_s30, %s829_s9  }
  0x2f   :  { %s787_s0 = scalar_lea.vmem %s75_s26, 512  ;;  %p792_p7 = scmp.lt.s32.totalorder %s75_s26, %s75_s26 }
  0x30   :  { %p788_p6 = scmp.ne.s32.totalorder %s75_s26, %s787_s0  ;;  %p793_p8 = scmp.lt.s32.totalorder %s787_s0, %s787_s0 }
  0x32   :  { %p794_p9 = por %p793_p8, %p792_p7 }
  0x34   :  { %p795_p10 = pnand %p794_p9, %p788_p6 }
  0x36   :  { %798 = shalt.err (!%p795_p10)
}
  0x37   :  { %80 = dma.hbm_to_vmem [thread:$0]  %s960_s6, 512, %s75_s26, [#allocation9], %s828_s30, %s828_s30, %s829_s9  }
  0x38   :  { %819 = dma.done.wait [#allocation3], 256  }
  0x39   :  { %820 = vsyncadd [#allocation3], 4294967040 }
  0x3a   :  { %821 = dma.done.wait [#allocation6], 1024  }
  0x3b   :  { %822 = vsyncadd [#allocation6], 4294966272 }
  0x3c   :  { %823 = dma.done.wait [#allocation9], 1024  }
  0x3d   :  { %824 = vsyncadd [#allocation9], 4294966272  ;;  %v909_v0 = vld [vmem:[#allocation5 + $0x18] sm:$0xff]  ;;  %v911_v1 = vld [vmem:[#allocation5 + $0x10] sm:$0xff]  ;;  %vm110_vm0 = vcmask 261120  }
  0x3e   :  { %633 = vmatprep.subr.mxu0 %v909_v0  ;;  %v593_v2 = vld [vmem:[#allocation2] sm:$0xff]   ;;  %v107_v3 = vld [vmem:[#allocation5 + $0x8] sm:$0xff]  ;;  %v211_v5 = vld [vmem:[#allocation7 + $0x18] sm:$0xff] }
  0x3f   :  { %634 = vmatpush3.msra.mxu0 %v909_v0  ;;  %v594_v4 = vunpack.c.l.bf16 %v593_v2  ;;  %v600_v6 = vld [vmem:[#allocation2 + $0x8] sm:$0xff]   ;;  %647 = vmatprep.subr.mxu1 %v211_v5  ;;  %v210_v7 = vld [vmem:[#allocation7 + $0x10] sm:$0xff]  ;;  %v106_v8 = vld [vmem:[#allocation5] sm:$0xff]  ;;  %v595_v9 = vunpack.c.h.bf16 %v593_v2 }
  0x40   :  { %635 = vmatprep.subr.mxu0 %v911_v1  ;;  %648 = vmatpush3.msra.mxu1 %v211_v5  ;;  %v598_v10 = vunpack.c.l.bf16 %v600_v6  ;;  %v599_v11 = vunpack.c.h.bf16 %v600_v6  ;;  %v209_v12 = vld [vmem:[#allocation7 + $0x8] sm:$0xff]  ;;  %v208_v13 = vld [vmem:[#allocation7] sm:$0xff]  ;;  %v323_v14 = vld [vmem:[#allocation8 + $0x18] sm:$0xff] }
  0x41   :  { %636 = vmatpush3.msra.mxu0 %v911_v1  ;;  %641 = vmatprep.mubr.msk.f32.mxu0 %vm110_vm0, %v594_v4  ;;  %v437_v19 = vld [vmem:[#allocation10 + $0x18] sm:$0xff]  ;;  %v322_v20 = vld [vmem:[#allocation8 + $0x10] sm:$0xff]  ;;  %v321_v22 = vld [vmem:[#allocation8 + $0x8] sm:$0xff] }
  0x42   :  { %637 = vmatprep.subr.mxu0 %v107_v3  ;;  %649 = vmatprep.subr.mxu1 %v210_v7  ;;  %v436_v21 = vld [vmem:[#allocation10 + $0x10] sm:$0xff]  ;;  %v435_v23 = vld [vmem:[#allocation10 + $0x8] sm:$0xff]  ;;  %v320_v24 = vld [vmem:[#allocation8] sm:$0xff] }
  0x43   :  { %638 = vmatpush3.msra.mxu0 %v107_v3  ;;  %650 = vmatpush3.msra.mxu1 %v210_v7  ;;  %v434_v25 = vld [vmem:[#allocation10] sm:$0xff]  ;;  %v577_v26 = vld [vmem:[%s957_s3] ss:$0 sm:$0xff] }
  0x44   :  { %639 = vmatprep.subr.mxu0 %v106_v8  ;;  %651 = vmatprep.subr.mxu1 %v209_v12  ;;  %v582_v40 = vld [vmem:[%s959_s5] ss:$0 sm:$0xff]  ;;  %s836_s5 = smov [#allocation11]  }
  0x45   :  { %640 = vmatpush3.msra.mxu0 %v106_v8  ;;  %652 = vmatpush3.msra.mxu1 %v209_v12  ;;  %v591_v44 = vld [vmem:[%s961_s7] ss:$0 sm:$0xff]  ;;  %s559_s14 = sshll.u32 %s836_s5, 4  ;;  %s560_s14 = int_to_ptr.vmem [resolvable:$true] %s559_s14 }
  0x46   :  { %642 = vmatmul.mubr.msk.f32.vlgmr.msra.gmra.mxu0 %vm110_vm0, %v595_v9  ;;  %653 = vmatprep.subr.mxu1 %v208_v13  ;;  %s799_s7 = scalar_lea.vmem %s560_s14, 512  ;;  %p804_p12 = scmp.lt.s32.totalorder %s560_s14, %s560_s14 }
  0x47   :  { %644 = vmatprep.mubr.msk.f32.mxu0 %vm110_vm0, %v598_v10  ;;  %654 = vmatpush3.msra.mxu1 %v208_v13  ;;  %p800_p11 = scmp.ne.s32.totalorder %s560_s14, %s799_s7  ;;  %p805_p13 = scmp.lt.s32.totalorder %s799_s7, %s799_s7 }
  0x48   :  { %661 = vmatprep.subr.mxu0 %v323_v14  ;;  %675 = vmatprep.subr.mxu1 %v437_v19 }
  0x49   :  { %662 = vmatpush3.msra.mxu0 %v323_v14  ;;  %p806_p0 = por %p805_p13, %p804_p12 }
  0x4a   :  { %645 = vmatmul.mubr.msk.f32.gmra.mxu0 %vm110_vm0, %v599_v11  ;;  %663 = vmatprep.subr.mxu0 %v322_v20 }
  0x4b   :  { %664 = vmatpush3.msra.mxu0 %v322_v20  ;;  %p807_p1 = pnand %p806_p0, %p800_p11 }
  0x4c   :  { %665 = vmatprep.subr.mxu0 %v321_v22 }
  0x4d   :  { %666 = vmatpush3.msra.mxu0 %v321_v22 }
  0x4e   :  { %667 = vmatprep.subr.mxu0 %v320_v24 }
  0x4f   :  { %668 = vmatpush3.msra.mxu0 %v320_v24 }
 0x106   :  { %v643_v15 = vpop.f32.mrf.mxu0 }
 0x108   :  { %v189_v16 = vpop.f32.mrf.mxu0 }
 0x109   :  { %655 = vmatprep.mubr.msk.f32.mxu1 %vm110_vm0, %v189_v16 }
 0x10a   :  { %v646_v17 = vpop.f32.mrf.mxu0  ;;  %656 = vmatmul.mubr.msk.f32.vlgmr.msra.gmra.mxu1 %vm110_vm0, %v643_v15 }
 0x10b   :  { %676 = vmatpush3.msra.mxu1 %v437_v19 }
 0x10c   :  { %v199_v18 = vpop.f32.mrf.mxu0  ;;  %677 = vmatprep.subr.mxu1 %v436_v21 }
 0x10d   :  { %658 = vmatprep.mubr.msk.f32.mxu1 %vm110_vm0, %v199_v18  ;;  %678 = vmatpush3.msra.mxu1 %v436_v21 }
 0x10e   :  { %659 = vmatmul.mubr.msk.f32.gmra.mxu1 %vm110_vm0, %v646_v17  ;;  %679 = vmatprep.subr.mxu1 %v435_v23 }
 0x10f   :  { %683 = vmatprep.mubr.msk.f32.mxu1 %vm110_vm0, %v106_v8  ;;  %680 = vmatpush3.msra.mxu1 %v435_v23 }
 0x110   :  { %681 = vmatprep.subr.mxu1 %v434_v25 }
 0x111   :  { %682 = vmatpush3.msra.mxu1 %v434_v25 }
 0x112   :  { %684 = vmatmul.mubr.msk.f32.vlgmr.msra.gmra.mxu1 %vm110_vm0, %v107_v3 }
 0x113   :  { %686 = vmatprep.mubr.msk.f32.mxu1 %vm110_vm0, %v911_v1 }
 0x116   :  { %687 = vmatmul.mubr.msk.f32.gmra.mxu1 %vm110_vm0, %v909_v0 }
 0x1ca   :  { %v657_v27 = vpop.f32.mrf.mxu1 }
 0x1cb   :  { %v303_v28 = vadd.f32 %v657_v27, %v577_v26 }
 0x1cc   :  { %v297_v29 = vpop.f32.mrf.mxu1 }
 0x1cd   :  { %v298_v30 = vadd.f32 %v577_v26, %v297_v29  ;;  %v317_v33 = vmax.f32 %v303_v28, 0.0 }
 0x1ce   :  { %v660_v31 = vpop.f32.mrf.mxu1 }
 0x1cf   :  { %v316_v32 = vmax.f32 %v298_v30, 0.0  ;;  %v313_v34 = vadd.f32 %v660_v31, %v577_v26 }
 0x1d0   :  { %v307_v35 = vpop.f32.mrf.mxu1 }
 0x1d1   :  { %v308_v36 = vadd.f32 %v577_v26, %v307_v35  ;;  %669 = vmatprep.mubr.msk.f32.mxu0 %vm110_vm0, %v316_v32  ;;  %v319_v38 = vmax.f32 %v313_v34, 0.0 }
 0x1d2   :  { %670 = vmatmul.mubr.msk.f32.vlgmr.msra.gmra.mxu0 %vm110_vm0, %v317_v33  ;;  %v685_v39 = vpop.f32.mrf.mxu1 }
 0x1d3   :  { %v318_v37 = vmax.f32 %v308_v36, 0.0 }
 0x1d4   :  { %v516_v42 = vpop.f32.mrf.mxu1 }
 0x1d5   :  { %672 = vmatprep.mubr.msk.f32.mxu0 %vm110_vm0, %v318_v37 }
 0x1d6   :  { %673 = vmatmul.mubr.msk.f32.gmra.mxu0 %vm110_vm0, %v319_v38  ;;  %v688_v49 = vpop.f32.mrf.mxu1 }
 0x1d8   :  { %v526_v57 = vpop.f32.mrf.mxu1 }
 0x292   :  { %v671_v41 = vpop.f32.mrf.mxu0 }
 0x293   :  { %v415_v43 = vadd.f32 %v671_v41, %v582_v40 }
 0x294   :  { %v409_v45 = vpop.f32.mrf.mxu0 }
 0x295   :  { %v536_v46 = vadd.f32 %v685_v39, %v415_v43  ;;  %v410_v47 = vadd.f32 %v582_v40, %v409_v45 }
 0x296   :  { %v674_v48 = vpop.f32.mrf.mxu0 }
 0x297   :  { %v547_v50 = vadd.f32 %v591_v44, %v536_v46  ;;  %v535_v51 = vadd.f32 %v516_v42, %v410_v47  ;;  %v425_v52 = vadd.f32 %v674_v48, %v582_v40 }
 0x298   :  { %v419_v53 = vpop.f32.mrf.mxu0 }
 0x299   :  { %551 = vst.msk [vmem:[#allocation11 + $0x8] sm:$0xff] %vm110_vm0, %v547_v50  ;;  %v546_v54 = vadd.f32 %v591_v44, %v535_v51  ;;  %v538_v55 = vadd.f32 %v688_v49, %v425_v52  ;;  %v420_v56 = vadd.f32 %v582_v40, %v419_v53 }
 0x29b   :  { %550 = vst.msk [vmem:[#allocation11] sm:$0xff] %vm110_vm0, %v546_v54  ;;  %v549_v58 = vadd.f32 %v591_v44, %v538_v55  ;;  %v537_v59 = vadd.f32 %v526_v57, %v420_v56 }
 0x29d   :  { %553 = vst.msk [vmem:[#allocation11 + $0x18] sm:$0xff] %vm110_vm0, %v549_v58  ;;  %v548_v60 = vadd.f32 %v591_v44, %v537_v59 }
 0x29f   :  { %552 = vst.msk [vmem:[#allocation11 + $0x10] sm:$0xff] %vm110_vm0, %v548_v60 }
 0x2a0   :  { %810 = shalt.err (!%p807_p1)
}
 0x2a1   :  { %565 = dma.vmem_to_hbm [thread:$0]  %s560_s14, 512, %s962_s8, [#allocation4], %s828_s30, %s828_s30, %s829_s9  }
 0x2a2   :  { %825 = dma.done.wait [#allocation4], 512  }
 0x2a3   :  { %826 = vsyncadd [#allocation4], 4294966784 }
 0x2a4   :  { %569 = vsyncpa [#allocation3], 1 }
 0x2a5   :  { %570 = vsyncpa [#allocation6], 1 }
 0x2a6   :  { %571 = vsyncpa [#allocation9], 1 }
 0x2a7   :  { %572 = vsyncpa [#allocation4], 1 }

</bundles_post_ra>
